<compile_context>
chip_gen: v7x
topology: tpu7x:2x2x1
jax: 0.10.0
libtpu: 0.0.40
codegen_flags: <defaults>
</compile_context>

<pallas_src>
import functools
import math

import numpy as np
import jax
import jax.numpy as jnp
from jax.experimental import pallas as pl
from jax.experimental.pallas import tpu as pltpu


def _round8(n):
    return ((n + 7) // 8) * 8


# --------------------------------------------------------------------------
# in-kernel building blocks (channels-first, spatial flattened into lanes)
# --------------------------------------------------------------------------
def _shift_src(x, delta, size, jnp_roll):
    """Return r with r[..., s] = x[..., (s + delta) % size] (XLU lane rotation)."""
    d = delta % size
    if d == 0:
        return x
    shift = (size - d) if jnp_roll else d
    return pltpu.roll(x, shift, axis=1)


def _conv3x3_cf(x, w, bias, mask_ref, H, W, act, jnp_roll):
    """3x3 conv (stride 1, pad 1) + bias + activation; BN scale pre-folded into w.

    x        : (Cin,  H*W)   activations (spatial flattened into lanes)
    w        : (Cout, 9*Cin) weights (scale-folded), K ordered (ky, kx, cin)
    bias     : (Cout, 1)
    mask_ref : (16, H*W) ref; rows 0..8 are the per-tap boundary validity masks.
    """
    HW = H * W
    taps = []
    k = 0
    for dy in (-1, 0, 1):
        for dx in (-1, 0, 1):
            # tap[c, y*W+x] = x[c, y+dy, x+dx] (zero outside the image)
            t = _shift_src(x, dy * W + dx, HW, jnp_roll)
            if dy != 0 or dx != 0:
                t = t * mask_ref[pl.ds(k, 1), :]
            taps.append(t)
            k += 1
    tmat = jnp.concatenate(taps, axis=0)                           # (9*Cin, H*W)
    acc = jnp.dot(w, tmat, preferred_element_type=jnp.float32) + bias
    if act == "relu":
        return jnp.maximum(acc, 0.0)
    return jax.nn.sigmoid(acc)


def _maxpool2_cf(x, sel, H, W, jnp_roll):
    """2x2/stride-2 max-pool: two lane rolls (pairwise maxes) + 0/1 selection matmul."""
    HW = H * W
    m = jnp.maximum(x, _shift_src(x, 1, HW, jnp_roll))   # max over x, x+1
    m = jnp.maximum(m, _shift_src(m, W, HW, jnp_roll))   # max over y, y+1
    return jnp.dot(m, sel, preferred_element_type=jnp.float32)     # gather even anchors


# --------------------------------------------------------------------------
# fused whole-network kernel (one grid step = one batch element)
# --------------------------------------------------------------------------
def _unet_kernel(*refs, H, W, nconv, jnp_roll):
    x_ref = refs[0]
    prm = refs[1:1 + 2 * nconv]
    (m0_ref, m1_ref, m2_ref,
     sel1_ref, sel2_ref, up1_ref, up2_ref) = refs[1 + 2 * nconv:8 + 2 * nconv]
    o_ref = refs[-1]

    def conv(i, x, mref, hh, ww, act="relu"):
        return _conv3x3_cf(x, prm[2 * i][...], prm[2 * i + 1][...],
                           mref, hh, ww, act, jnp_roll)

    H1, W1 = H // 2, W // 2
    H2, W2 = H // 4, W // 4

    x0 = x_ref[0]                                                  # (Cin_pad, H*W)

    # encoder
    e0 = conv(1, conv(0, x0, m0_ref, H, W), m0_ref, H, W)
    e1 = conv(3, conv(2, _maxpool2_cf(e0, sel1_ref[...], H, W, jnp_roll),
                      m1_ref, H1, W1), m1_ref, H1, W1)
    e2 = conv(5, conv(4, _maxpool2_cf(e1, sel2_ref[...], H1, W1, jnp_roll),
                      m2_ref, H2, W2), m2_ref, H2, W2)

    # UNet decoder: nearest-upsample (0/1 matmul), skip concat, double conv
    d1 = jnp.concatenate(
        [jnp.dot(e2, up1_ref[...], preferred_element_type=jnp.float32), e1], axis=0)
    d1 = conv(7, conv(6, d1, m1_ref, H1, W1), m1_ref, H1, W1)
    d0 = jnp.concatenate(
        [jnp.dot(d1, up2_ref[...], preferred_element_type=jnp.float32), e0], axis=0)
    d0 = conv(9, conv(8, d0, m0_ref, H, W), m0_ref, H, W)

    # segmentation head: Conv2d 3x3 (+bias) + Sigmoid  -> Network_Unet's `pred`
    o_ref[0] = conv(10, d0, m0_ref, H, W, act="sigmoid")


# --------------------------------------------------------------------------
# host-side constant matrices / masks
# --------------------------------------------------------------------------
def _tap_masks(H, W):
    """(16, H*W) f32; row k (k<9) = boundary validity for tap (dy, dx)."""
    m = np.zeros((16, H * W), np.float32)
    ys, xs = np.meshgrid(np.arange(H), np.arange(W), indexing="ij")
    ys, xs = ys.reshape(-1), xs.reshape(-1)
    k = 0
    for dy in (-1, 0, 1):
        for dx in (-1, 0, 1):
            valid = (ys + dy >= 0) & (ys + dy < H) & (xs + dx >= 0) & (xs + dx < W)
            m[k] = valid.astype(np.float32)
            k += 1
    return m


def _pool_select_mat(H, W):
    Hq, Wq = H // 2, W // 2
    S = np.zeros((H * W, Hq * Wq), np.float32)
    for yo in range(Hq):
        for xo in range(Wq):
            S[(2 * yo) * W + 2 * xo, yo * Wq + xo] = 1.0
    return S


def _upsample_mat(Hq, Wq):
    H, W = 2 * Hq, 2 * Wq
    U = np.zeros((Hq * Wq, H * W), np.float32)
    for y in range(H):
        for x in range(W):
            U[(y // 2) * Wq + (x // 2), y * W + x] = 1.0
    return U


# --------------------------------------------------------------------------
# deterministic parameters
# --------------------------------------------------------------------------
def init_params(key, in_ch=3, out_dim=3):
    """11 conv layers: Conv3x3 + folded-BN + ReLU, final layer Conv3x3 + bias (Sigmoid head)."""
    c0, c1, c2 = 16, 32, 48               # multiples of 8 -> sublane aligned
    defs = [(in_ch, c0), (c0, c0),        # enc0
            (c0, c1), (c1, c1),           # enc1
            (c1, c2), (c2, c2),           # enc2
            (c2 + c1, c1), (c1, c1),      # dec1: cat[up(e2), e1]
            (c1 + c0, c0), (c0, c0),      # dec0: cat[up(d1), e0]
            (c0, out_dim)]                # segmentation head
    layers = []
    for idx, ((ci, co), k) in enumerate(zip(defs, jax.random.split(key, len(defs)))):
        k1, k2, k3 = jax.random.split(k, 3)
        w4 = (jax.random.normal(k1, (3, 3, ci, co)) / math.sqrt(9.0 * ci)).astype(jnp.float32)
        if idx == len(defs) - 1:          # head: no BN, plain conv bias
            scale = jnp.ones((co,), jnp.float32)
        else:
            scale = (1.0 + 0.1 * jax.random.normal(k2, (co,))).astype(jnp.float32)
        bias = (0.1 * jax.random.normal(k3, (co,))).astype(jnp.float32)
        layers.append({"w4": w4, "scale": scale, "bias": bias})
    return layers


def _pack_params(layers):
    """Repack (3,3,Cin,Cout) weights into lane-dense (Cout,9*Cin); fold BN scale into W."""
    flat = []
    for lyr in layers:
        w4, scale, bias = lyr["w4"], lyr["scale"], lyr["bias"]
        _, _, ci, co = w4.shape
        cip, cop = _round8(ci), _round8(co)
        w4p = jnp.pad(w4, ((0, 0), (0, 0), (0, cip - ci), (0, cop - co)))
        wflat = jnp.transpose(w4p, (3, 0, 1, 2)).reshape(cop, 9 * cip)   # (Cout, 9*Cin)
        sp = jnp.pad(scale, (0, cop - co), constant_values=1.0).reshape(cop, 1)
        bp = jnp.pad(bias, (0, cop - co)).reshape(cop, 1)
        flat += [wflat * sp, bp]          # scale folded into weights
    return flat


# --------------------------------------------------------------------------
# forward builder (single fused pallas_call, grid over batch)
# --------------------------------------------------------------------------
def make_network_unet_forward(layers, H, W, in_ch, out_dim, jnp_roll):
    assert H % 4 == 0 and W % 4 == 0
    HW = H * W
    nconv = len(layers)
    cin_pad = _round8(in_ch)
    cout_pad = _round8(out_dim)

    flat = _pack_params(layers)
    consts = [jnp.asarray(_tap_masks(H, W)),
              jnp.asarray(_tap_masks(H // 2, W // 2)),
              jnp.asarray(_tap_masks(H // 4, W // 4)),
              jnp.asarray(_pool_select_mat(H, W)),
              jnp.asarray(_pool_select_mat(H // 2, W // 2)),
              jnp.asarray(_upsample_mat(H // 4, W // 4)),
              jnp.asarray(_upsample_mat(H // 2, W // 2))]

    kern = functools.partial(_unet_kernel, H=H, W=W, nconv=nconv, jnp_roll=jnp_roll)

    # one batch element per grid step; params/constants use a constant index_map
    # so they are DMA'd into VMEM once and reused across grid steps.
    in_specs = [pl.BlockSpec((1, cin_pad, HW), lambda b: (b, 0, 0))]
    in_specs += [pl.BlockSpec(a.shape, lambda b: (0, 0)) for a in flat + consts]
    out_spec = pl.BlockSpec((1, cout_pad, HW), lambda b: (b, 0, 0))

    def forward(im_q):
        B = im_q.shape[0]
        x = im_q.reshape(B, in_ch, HW)                              # NCHW -> (B, C, H*W)
        x = jnp.pad(x, ((0, 0), (0, cin_pad - in_ch), (0, 0)))      # pad 3 -> 8 channels
        out = pl.pallas_call(
            kern,
            out_shape=jax.ShapeDtypeStruct((B, cout_pad, HW), jnp.float32),
            grid=(B,),
            in_specs=in_specs,
            out_specs=out_spec,
            compiler_params=pltpu.CompilerParams(
                dimension_semantics=("parallel",),   # shard batch across TCs (v7x)
            ),
        )(x, *flat, *consts)
        return out[:, :out_dim, :].reshape(B, out_dim, H, W)        # back to NCHW

    return jax.jit(forward)


# --------------------------------------------------------------------------
# pure-JAX (XLA) reference with identical math — correctness check
# --------------------------------------------------------------------------
def reference_forward(im_q, layers):
    def conv(x, lyr, act):
        y = jax.lax.conv_general_dilated(
            x, lyr["w4"], window_strides=(1, 1), padding=((1, 1), (1, 1)),
            dimension_numbers=("NCHW", "HWIO", "NCHW"),
            precision=jax.lax.Precision.HIGHEST)
        y = y * lyr["scale"].reshape(1, -1, 1, 1) + lyr["bias"].reshape(1, -1, 1, 1)
        return jnp.maximum(y, 0.0) if act == "relu" else jax.nn.sigmoid(y)

    def pool(x):
        return jax.lax.reduce_window(x, -jnp.inf, jax.lax.max,
                                     (1, 1, 2, 2), (1, 1, 2, 2), "VALID")

    def up(x):
        return jnp.repeat(jnp.repeat(x, 2, axis=2), 2, axis=3)

    e0 = conv(conv(im_q, layers[0], "relu"), layers[1], "relu")
    e1 = conv(conv(pool(e0), layers[2], "relu"), layers[3], "relu")
    e2 = conv(conv(pool(e1), layers[4], "relu"), layers[5], "relu")
    d1 = conv(conv(jnp.concatenate([up(e2), e1], 1), layers[6], "relu"), layers[7], "relu")
    d0 = conv(conv(jnp.concatenate([up(d1), e0], 1), layers[8], "relu"), layers[9], "relu")
    return conv(d0, layers[10], "sigmoid")


# --------------------------------------------------------------------------
# tiny runtime probe to pin down pltpu.roll's rotation direction
# --------------------------------------------------------------------------
def _probe_roll_semantics():
    """Returns True if pltpu.roll matches jnp.roll (out[i] = x[(i - shift) % N])."""
    def k(x_ref, o_ref):
        o_ref[...] = pltpu.roll(x_ref[...], 1, axis=1)

    x = jax.lax.broadcasted_iota(jnp.float32, (8, 128), 1)
    out = pl.pallas_call(k, out_shape=jax.ShapeDtypeStruct((8, 128), jnp.float32))(x)
    v = float(out[0, 0])
    if v == 127.0:
        return True
    if v == 1.0:
        return False
    raise RuntimeError(f"unexpected pltpu.roll probe result: {v}")


if __name__ == "__main__":
    key = jax.random.PRNGKey(0)
    kx, kp = jax.random.split(key)

    B, C, H, W = 2, 3, 16, 16
    out_dim = 3
    im_q = jax.random.normal(kx, (B, C, H, W), jnp.float32)
    layers = init_params(kp, in_ch=C, out_dim=out_dim)

    jnp_roll = _probe_roll_semantics()
    fwd = make_network_unet_forward(layers, H, W, C, out_dim, jnp_roll)

    pred = fwd(im_q)
    jax.block_until_ready(pred)

    assert pred.shape == (B, out_dim, H, W), pred.shape
    assert bool(jnp.all(jnp.isfinite(pred)))
    assert bool(jnp.all((pred >= 0.0) & (pred <= 1.0)))          # sigmoid head

    ref = jax.jit(functools.partial(reference_forward, layers=layers))(im_q)
    jax.block_until_ready(ref)
    err = float(jnp.max(jnp.abs(pred - ref)))
    assert err < 2e-3, f"Pallas vs pure-JAX reference mismatch: max|diff|={err}"

    print("KERNEL_OK")
</pallas_src>

<mosaic_0001>
module attributes {stable_mosaic.version = 11 : i64} {
  func.func @k(%arg0: memref<8x128xf32, #tpu.memory_space<vmem>>, %arg1: memref<8x128xf32, #tpu.memory_space<vmem>>) attributes {dimension_semantics = [], scalar_prefetch = 0 : i64, scratch_operands = 0 : i64, tpu.core_type = #tpu.core_type<tc>} {
    %c0 = arith.constant 0 : index
    %c0_0 = arith.constant 0 : index
    %0 = vector.load %arg0[%c0, %c0_0] : memref<8x128xf32, #tpu.memory_space<vmem>>, vector<8x128xf32>
    %c1_i32 = arith.constant 1 : i32
    %1 = tpu.dynamic_rotate %0 by %c1_i32 dim 1 : vector<8x128xf32>, i32 -> vector<8x128xf32>
    %c0_1 = arith.constant 0 : index
    %c0_2 = arith.constant 0 : index
    %2 = vector.load %arg1[%c0_1, %c0_2] : memref<8x128xf32, #tpu.memory_space<vmem>>, vector<8x128xf32>
    tpu.vector_store %arg1[%c0_1, %c0_2], %1 {strides = array<i32>} : memref<8x128xf32, #tpu.memory_space<vmem>>, vector<8x128xf32>,
    return
  }
}

</mosaic_0001>

<bundles_post_ra>
// kernel: tpu_custom_call.1
= control target key start
LH: loop header
LB: loop body
LE: loop exit
PB: predicated region body
PF: predicated region fallthrough
CT: control target
= control target key end

     0   :  { %6 = vsyncpa [#allocation3], 0  ;;  %s128_s0 = inlined_call_operand.hbm [shape: f32[8,128], index: 0, kind: input, shape index: {}]   ;;  %s129_s1 = inlined_call_operand.hbm [shape: f32[8,128], index: 1, kind: output, shape index: {}]  }
   0x1   :  { %7 = vsyncpa [#allocation4], 0  ;;  %s91_s6 = smov [#allocation2]   ;;  %s43_s10 = scalar_lea.hbm %s128_s0, 128 }
   0x2   :  { %s14_s7 = sshll.u32 %s91_s6, 4  ;;  %p44_p0 = scmp.ne.s32.totalorder %s128_s0, %s43_s10  ;;  %s15_s7 = int_to_ptr.vmem [resolvable:$true] %s14_s7 }
   0x3   :  { %p47_p1 = scmp.lt.u32.totalorder %s43_s10, %s128_s0 }
   0x5   :  { %p49_p2 = pnand %p47_p1, %p44_p0 }
   0x7   :  { %52 = shalt.err (!%p49_p2)
}
   0x8   :  { %s53_s15 = scalar_lea.vmem %s15_s7, 128  ;;  %p58_p4 = scmp.lt.s32.totalorder %s15_s7, %s15_s7 }
   0x9   :  { %p54_p3 = scmp.ne.s32.totalorder %s15_s7, %s53_s15  ;;  %p59_p5 = scmp.lt.s32.totalorder %s53_s15, %s53_s15 }
   0xb   :  { %p60_p6 = por %p59_p5, %p58_p4 }
   0xd   :  { %p61_p7 = pnand %p60_p6, %p54_p3 }
   0xf   :  { %64 = shalt.err (!%p61_p7)
}
  0x10   :  { %17 = dma.hbm_to_vmem [thread:$0]  %s128_s0, 128, %s15_s7, [#allocation3]  }
  0x11   :  { %87 = dma.done.wait [#allocation3], 128  }
  0x12   :  { %88 = vsyncadd [#allocation3], 4294967168  ;;  %v21_v0 = vld [vmem:[#allocation2] sm:$0xff]  ;;  %s92_s18 = smov 1   ;;  %s93_s19 = smov [#allocation5]  }
  0x13   :  { %22 = vrot.lane.b32.xlu0 %v21_v0, %s92_s18  ;;  %s31_s20 = sshll.u32 %s93_s19, 4  ;;  %s32_s20 = int_to_ptr.vmem [resolvable:$true] %s31_s20 }
  0x14   :  { %s65_s21 = scalar_lea.vmem %s32_s20, 128  ;;  %p70_p9 = scmp.lt.s32.totalorder %s32_s20, %s32_s20 }
  0x15   :  { %p66_p8 = scmp.ne.s32.totalorder %s32_s20, %s65_s21  ;;  %p71_p10 = scmp.lt.s32.totalorder %s65_s21, %s65_s21 }
  0x17   :  { %p72_p11 = por %p71_p10, %p70_p9 }
  0x19   :  { %p73_p12 = pnand %p72_p11, %p66_p8 }
  0x85   :  { %v23_v1 = vpop.permute.xlu0 %22 }
  0x86   :  { %24 = vst [vmem:[#allocation5] sm:$0xff] %v23_v1 }
  0x87   :  { %76 = shalt.err (!%p73_p12)
}
  0x88   :  { %s77_s0 = scalar_lea.hbm %s129_s1, 128 }
  0x89   :  { %p78_p13 = scmp.ne.s32.totalorder %s129_s1, %s77_s0  ;;  %p81_p0 = scmp.lt.u32.totalorder %s77_s0, %s129_s1 }
  0x8b   :  { %p83_p1 = pnand %p81_p0, %p78_p13 }
  0x8d   :  { %86 = shalt.err (!%p83_p1)
}
  0x8e   :  { %34 = dma.vmem_to_hbm [thread:$0]  %s32_s20, 128, %s129_s1, [#allocation4]  }
  0x8f   :  { %89 = dma.done.wait [#allocation4], 128  }
  0x90   :  { %90 = vsyncadd [#allocation4], 4294967168 }
  0x91   :  { %38 = vsyncpa [#allocation3], 1 }
  0x92   :  { %39 = vsyncpa [#allocation4], 1 }

</bundles_post_ra>
